<compile_context>
chip_gen: v7x
topology: tpu7x:2x2x1
jax: 0.10.0
libtpu: 0.0.40
codegen_flags: <defaults>
</compile_context>

<pallas_src>
import math

import numpy as np
import jax
import jax.numpy as jnp
from jax.experimental import pallas as pl
from jax.experimental.pallas import tpu as pltpu

NEG_FILL = -32752.0  # reference: masked_fill_(mask, -INF) with INF = 32752


def _round_up(x, m):
    return -(-x // m) * m


def _gelu_tanh(x):
    # tanh-form GELU: 0.5*x*(1 + tanh(sqrt(2/pi)*(x + 0.044715*x^3))).
    # Max abs error vs. the exact erf form (torch.nn.GELU default) is ~1e-3.
    c = math.sqrt(2.0 / math.pi)
    return 0.5 * x * (1.0 + jnp.tanh(c * (x + 0.044715 * (x * x * x))))


# ----------------------------------------------------------------------------
# Pallas kernel: one grid step == TB batch rows.
# ----------------------------------------------------------------------------
def _genpool_kernel(f_ref, len_ref, w1_ref, b1_ref, w2_ref, b2_ref, o_ref):
    # f_ref  : (TB, Sp, Dp)  features block, matmul dtype (bf16)
    # len_ref: (TB, 1, 1)    int32 valid lengths for these TB batch rows
    # w1_ref : (Dp, Ap)      heads concatenated along columns (bf16)
    # b1_ref : (1, Ap)       f32
    # w2_ref : (Ap, Dp)      block-diagonal over heads (bf16)
    # b2_ref : (1, Dp)       f32
    # o_ref  : (TB, 1, Dp)   pooled output, f32
    TB, S, Dp = f_ref.shape

    f = f_ref[...]                                           # single read of the block

    # --- matmul -> +bias -> GELU -> matmul -> +bias (M-dim = TB*S) -----------
    h = jnp.dot(f.reshape(TB * S, Dp), w1_ref[...],
                preferred_element_type=jnp.float32) + b1_ref[...]   # (TB*S, Ap) f32
    h = _gelu_tanh(h)
    s = jnp.dot(h.astype(w2_ref.dtype), w2_ref[...],
                preferred_element_type=jnp.float32) + b2_ref[...]   # (TB*S, Dp) f32
    s = s.reshape(TB, S, Dp)

    # --- padding mask from the (TB,1,1) lengths block -------------------------
    # position t is padded iff t >= lengths[b] (also covers host-side seq
    # padding, since lengths <= original S <= Sp).
    seq_iota = jax.lax.broadcasted_iota(jnp.int32, (TB, S, 1), 1)
    s = jnp.where(seq_iota >= len_ref[...], NEG_FILL, s)

    # --- per-channel softmax over seq fused with the weighted sum ------------
    s_max = jnp.max(s, axis=1, keepdims=True)                # (TB, 1, Dp)
    e = jnp.exp(s - s_max)                                    # (TB, S, Dp)
    denom = jnp.sum(e, axis=1, keepdims=True)                 # (TB, 1, Dp)
    acc = jnp.sum(f.astype(jnp.float32) * e, axis=1, keepdims=True)
    o_ref[...] = acc / denom                                  # exact divide (tolerance margin)


# ----------------------------------------------------------------------------
# Per-generation VMEM budget / scoped limit / minimum grid steps.
# ----------------------------------------------------------------------------
def _vmem_config():
    try:
        cap = pltpu.get_tpu_info().vmem_capacity_bytes
    except Exception:  # detection unavailable -> conservative (v7x-safe) defaults
        cap = None
    if cap is not None and cap > (64 << 20):
        # v5e / v6e: 128 MiB physical VMEM, single TensorCore per chip.
        return 48 << 20, 64 << 20, 2
    # v7x (64 MiB VMEM, 2 TCs/chip -> keep >= 2 grid steps per core) or unknown.
    min_grid = 4 if cap is not None else 2
    return 24 << 20, 32 << 20, min_grid


def _choose_tb(batch, seq, d_pad, a_pad, vmem_budget, min_grid, max_m=2048):
    """Rows per grid step: as large as the VMEM budget allows, targeting
    M = TB*seq in the 1-2K range while keeping >= min_grid grid steps."""
    per_row = (2 * seq * d_pad * 2                 # double-buffered bf16 feature block
               + 2 * d_pad * 4                     # double-buffered f32 output block
               + seq * (a_pad + 2 * d_pad) * 4)    # live f32 intermediates (h, e, f32 feats)
    fixed = 2 * (2 * d_pad * a_pad * 2 + (a_pad + d_pad) * 4)  # weights+biases (worst case 2x buf)
    tb = max(1, (vmem_budget - fixed) // per_row)
    tb = min(tb, max(1, max_m // seq), batch)
    if batch >= min_grid:
        tb = min(tb, -(-batch // min_grid))        # keep >= min_grid grid steps
    return int(max(1, tb))


def _build_genpool_call(Bp, Sp, TB, Dp, Ap, vmem_limit, weight_mode):
    wkw = {} if weight_mode is None else {"pipeline_mode": weight_mode}
    return pl.pallas_call(
        _genpool_kernel,
        out_shape=jax.ShapeDtypeStruct((Bp, 1, Dp), jnp.float32),
        grid=(Bp // TB,),
        in_specs=[
            pl.BlockSpec((TB, Sp, Dp), lambda b: (b, 0, 0)),    # features
            pl.BlockSpec((TB, 1, 1), lambda b: (b, 0, 0)),      # lengths
            pl.BlockSpec((Dp, Ap), lambda b: (0, 0), **wkw),    # W1 (replicated)
            pl.BlockSpec((1, Ap), lambda b: (0, 0), **wkw),     # b1
            pl.BlockSpec((Ap, Dp), lambda b: (0, 0), **wkw),    # W2 block-diag
            pl.BlockSpec((1, Dp), lambda b: (0, 0), **wkw),     # b2
        ],
        out_specs=pl.BlockSpec((TB, 1, Dp), lambda b: (b, 0, 0)),
        compiler_params=pltpu.CompilerParams(
            dimension_semantics=("parallel",),
            vmem_limit_bytes=vmem_limit,
        ),
    )


def gen_pool_pallas(fused_params, features, lengths, *, matmul_dtype=jnp.bfloat16):
    """One GenPool forward.  features: (B, S, D) f32, lengths: (B,) int."""
    W1, B1, W2, B2 = fused_params             # padded: (Dp,Ap),(1,Ap),(Ap,Dp),(1,Dp)
    B, S, D = features.shape
    Dp, Ap = W1.shape

    budget, vmem_limit, min_grid = _vmem_config()
    Sp = _round_up(max(S, 16), 16)             # bf16 sublane tile -> copy-free reshapes
    TB = _choose_tb(B, Sp, Dp, Ap, budget, min_grid)
    Bp = _round_up(B, TB)

    f = jnp.pad(features, ((0, Bp - B), (0, Sp - S), (0, Dp - D))).astype(matmul_dtype)
    lens = jnp.pad(lengths.astype(jnp.int32), (0, Bp - B)).reshape(Bp, 1, 1)
    args = (f, lens, W1.astype(matmul_dtype), B1, W2.astype(matmul_dtype), B2)

    try:
        # Constant-index weight operands: single-buffered to save VMEM.
        out = _build_genpool_call(Bp, Sp, TB, Dp, Ap, vmem_limit, pl.Buffered(1))(*args)
    except Exception:
        # Fallback: default (double) buffering if Buffered(1) is unsupported.
        out = _build_genpool_call(Bp, Sp, TB, Dp, Ap, vmem_limit, None)(*args)

    return out.reshape(Bp, Dp)[:B, :D]


def multi_gen_pool(fused_pool_params, features, lengths):
    """Faithful to the reference: `features` is re-assigned to each pool's output."""
    feats = features
    stack = []
    for fused in fused_pool_params:
        feats = gen_pool_pallas(fused, feats, lengths)
        stack.append(feats)
    return jnp.concatenate(stack, axis=-1)


# ----------------------------------------------------------------------------
# Parameter construction (shapes from GenPool.__init__) + fusing / padding.
# ----------------------------------------------------------------------------
def init_genpool_params(key, d_input, d_attn, n_heads):
    if d_attn == 0:
        d_attn = d_input
    d_head = d_attn // n_heads
    d_out = d_input // n_heads
    k1, k2, k3, k4 = jax.random.split(key, 4)
    w1 = 0.05 * jax.random.normal(k1, (n_heads, d_input, d_head), jnp.float32)
    b1 = 0.05 * jax.random.normal(k2, (n_heads, d_head), jnp.float32)
    w2 = 0.05 * jax.random.normal(k3, (n_heads, d_head, d_out), jnp.float32)
    b2 = 0.05 * jax.random.normal(k4, (n_heads, d_out), jnp.float32)
    return w1, b1, w2, b2


def fuse_genpool_params(w1, b1, w2, b2, lane=128):
    """Concat heads (W1), block-diagonalize (W2), zero-pad to 128-lane multiples."""
    H, D, dh = w1.shape
    do = w2.shape[2]
    A, Dout = H * dh, H * do                   # Dout == D for valid GenPool configs
    W1 = jnp.transpose(w1, (1, 0, 2)).reshape(D, A)
    B1 = b1.reshape(1, A)
    W2 = jnp.zeros((A, Dout), jnp.float32)
    for h in range(H):
        W2 = W2.at[h * dh:(h + 1) * dh, h * do:(h + 1) * do].set(w2[h])
    B2 = b2.reshape(1, Dout)

    Dp = _round_up(max(D, Dout), lane)
    Ap = _round_up(A, lane)
    W1p = jnp.zeros((Dp, Ap), jnp.float32).at[:D, :A].set(W1)
    B1p = jnp.zeros((1, Ap), jnp.float32).at[:, :A].set(B1)
    W2p = jnp.zeros((Ap, Dp), jnp.float32).at[:A, :Dout].set(W2)
    B2p = jnp.zeros((1, Dp), jnp.float32).at[:, :Dout].set(B2)
    return W1p, B1p, W2p, B2p


# ----------------------------------------------------------------------------
# Pure-JAX reference mirroring the PyTorch math (eval mode -> dropout = identity).
# `matmul_dtype` / `tanh_gelu` mirror the kernel's numeric policy for a tight check.
# ----------------------------------------------------------------------------
def gen_pool_ref(raw_params, features, mask, matmul_dtype=jnp.float32, tanh_gelu=False):
    w1, b1, w2, b2 = raw_params
    fmm = features.astype(matmul_dtype).astype(jnp.float32)
    x = jnp.einsum('bsd,hdk->bhsk', fmm,
                   w1.astype(matmul_dtype).astype(jnp.float32)) + b1[None, :, None, :]
    x = _gelu_tanh(x) if tanh_gelu else jax.nn.gelu(x, approximate=False)
    x = jnp.einsum('bhsk,hko->bhso', x.astype(matmul_dtype).astype(jnp.float32),
                   w2.astype(matmul_dtype).astype(jnp.float32)) + b2[None, :, None, :]
    x = jnp.where(mask[:, None, :, None], NEG_FILL, x)
    sm = jax.nn.softmax(x, axis=2)
    Bsz, H, S, do = sm.shape
    sm = jnp.transpose(sm, (0, 2, 1, 3)).reshape(Bsz, S, H * do)
    return (fmm * sm).sum(axis=1)


def multi_gen_pool_ref(raw_pool_params, features, mask,
                       matmul_dtype=jnp.float32, tanh_gelu=False):
    feats = features
    stack = []
    for raw in raw_pool_params:
        feats = gen_pool_ref(raw, feats, mask, matmul_dtype, tanh_gelu)
        stack.append(feats)
    return jnp.concatenate(stack, axis=-1)


if __name__ == "__main__":
    B, S, D = 2, 8, 32
    n_heads, d_attn, n_pools = 4, 16, 1   # n_pools=1: only config the reference supports

    key = jax.random.PRNGKey(0)
    kf, kp = jax.random.split(key)
    features = jax.random.normal(kf, (B, S, D), jnp.float32)
    lengths = jnp.array([S, 5], dtype=jnp.int32)
    mask = jnp.arange(S)[None, :] >= lengths[:, None]   # (B, S) bool, True = padding

    raw_params, fused_params = [], []
    for k in jax.random.split(kp, n_pools):
        raw = init_genpool_params(k, D, d_attn, n_heads)
        raw_params.append(raw)
        fused_params.append(fuse_genpool_params(*raw))

    out = multi_gen_pool(fused_params, features, lengths)
    out = jax.block_until_ready(out)

    # Primary check: reference with the kernel's numeric policy (bf16 matmul
    # operands + f32 accumulation, tanh GELU, f32 elementwise math).
    ref_mixed = multi_gen_pool_ref(raw_params, features, mask,
                                   matmul_dtype=jnp.bfloat16, tanh_gelu=True)
    np.testing.assert_allclose(np.asarray(out), np.asarray(ref_mixed),
                               rtol=2e-3, atol=2e-3)
    # Secondary sanity check: full-f32 exact-GELU (PyTorch-semantics) reference
    # bounds the mixed-precision + tanh-GELU drift.
    ref_f32 = multi_gen_pool_ref(raw_params, features, mask,
                                 matmul_dtype=jnp.float32, tanh_gelu=False)
    np.testing.assert_allclose(np.asarray(out), np.asarray(ref_f32),
                               rtol=3e-2, atol=3e-2)
    print("KERNEL_OK")
</pallas_src>

<mosaic_0001>
module attributes {stable_mosaic.version = 11 : i64} {
  func.func @_genpool_kernel(%arg0: i32, %arg1: memref<1x16x128xbf16, #tpu.memory_space<vmem>>, %arg2: memref<1x1x1xi32, #tpu.memory_space<vmem>>, %arg3: memref<128x128xbf16, #tpu.memory_space<vmem>>, %arg4: memref<1x128xf32, #tpu.memory_space<vmem>>, %arg5: memref<128x128xbf16, #tpu.memory_space<vmem>>, %arg6: memref<1x128xf32, #tpu.memory_space<vmem>>, %arg7: memref<1x1x128xf32, #tpu.memory_space<vmem>>) attributes {dimension_semantics = [#tpu.dimension_semantics<parallel>], iteration_bounds = array<i64: 2>, scalar_prefetch = 0 : i64, scratch_operands = 0 : i64, tpu.core_type = #tpu.core_type<tc>, window_params = [{transform_indices = @transform_0, window_bounds = array<i64: 1, 16, 128>}, {transform_indices = @transform_1, window_bounds = array<i64: 1, 1, 1>}, {pipeline_mode = #tpu.pipeline_mode<synchronous>, transform_indices = @transform_2, window_bounds = array<i64: 128, 128>}, {pipeline_mode = #tpu.pipeline_mode<synchronous>, transform_indices = @transform_3, window_bounds = array<i64: 1, 128>}, {pipeline_mode = #tpu.pipeline_mode<synchronous>, transform_indices = @transform_4, window_bounds = array<i64: 128, 128>}, {pipeline_mode = #tpu.pipeline_mode<synchronous>, transform_indices = @transform_5, window_bounds = array<i64: 1, 128>}, {transform_indices = @transform_6, window_bounds = array<i64: 1, 1, 128>}]} {
    %c0 = arith.constant 0 : index
    %c0_0 = arith.constant 0 : index
    %c0_1 = arith.constant 0 : index
    %0 = vector.load %arg1[%c0, %c0_0, %c0_1] : memref<1x16x128xbf16, #tpu.memory_space<vmem>>, vector<1x16x128xbf16>
    %1 = vector.shape_cast %0 : vector<1x16x128xbf16> to vector<16x128xbf16>
    %c0_2 = arith.constant 0 : index
    %c0_3 = arith.constant 0 : index
    %2 = vector.load %arg3[%c0_2, %c0_3] : memref<128x128xbf16, #tpu.memory_space<vmem>>, vector<128x128xbf16>
    %cst = arith.constant dense<0.000000e+00> : vector<16x128xf32>
    %3 = tpu.matmul %1, %2, %cst {dimension_numbers = #tpu.dot_dimension_numbers<[1], [0], [0], [1], [0, 0, 1, 1], [], []>} : vector<16x128xbf16>, vector<128x128xbf16>, vector<16x128xf32> -> vector<16x128xf32>
    %c0_4 = arith.constant 0 : index
    %c0_5 = arith.constant 0 : index
    %4 = vector.load %arg4[%c0_4, %c0_5] : memref<1x128xf32, #tpu.memory_space<vmem>>, vector<1x128xf32>
    %5 = vector.broadcast %4 : vector<1x128xf32> to vector<16x128xf32>
    %6 = arith.addf %3, %5 : vector<16x128xf32>
    %cst_6 = arith.constant 5.000000e-01 : f32
    %7 = vector.broadcast %cst_6 : f32 to vector<16x128xf32>
    %8 = arith.mulf %7, %6 : vector<16x128xf32>
    %9 = arith.mulf %6, %6 : vector<16x128xf32>
    %10 = arith.mulf %9, %6 : vector<16x128xf32>
    %cst_7 = arith.constant 4.471500e-02 : f32
    %11 = vector.broadcast %cst_7 : f32 to vector<16x128xf32>
    %12 = arith.mulf %11, %10 : vector<16x128xf32>
    %13 = arith.addf %6, %12 : vector<16x128xf32>
    %cst_8 = arith.constant 0.797884583 : f32
    %14 = vector.broadcast %cst_8 : f32 to vector<16x128xf32>
    %15 = arith.mulf %14, %13 : vector<16x128xf32>
    %16 = math.tanh %15 : vector<16x128xf32>
    %cst_9 = arith.constant 1.000000e+00 : f32
    %17 = vector.broadcast %cst_9 : f32 to vector<16x128xf32>
    %18 = arith.addf %17, %16 : vector<16x128xf32>
    %19 = arith.mulf %8, %18 : vector<16x128xf32>
    %20 = arith.truncf %19 : vector<16x128xf32> to vector<16x128xbf16>
    %c0_10 = arith.constant 0 : index
    %c0_11 = arith.constant 0 : index
    %21 = vector.load %arg5[%c0_10, %c0_11] : memref<128x128xbf16, #tpu.memory_space<vmem>>, vector<128x128xbf16>
    %cst_12 = arith.constant dense<0.000000e+00> : vector<16x128xf32>
    %22 = tpu.matmul %20, %21, %cst_12 {dimension_numbers = #tpu.dot_dimension_numbers<[1], [0], [0], [1], [0, 0, 1, 1], [], []>} : vector<16x128xbf16>, vector<128x128xbf16>, vector<16x128xf32> -> vector<16x128xf32>
    %c0_13 = arith.constant 0 : index
    %c0_14 = arith.constant 0 : index
    %23 = vector.load %arg6[%c0_13, %c0_14] : memref<1x128xf32, #tpu.memory_space<vmem>>, vector<1x128xf32>
    %24 = vector.broadcast %23 : vector<1x128xf32> to vector<16x128xf32>
    %25 = arith.addf %22, %24 : vector<16x128xf32>
    %26 = vector.shape_cast %25 : vector<16x128xf32> to vector<1x16x128xf32>
    %27 = tpu.iota {dimensions = array<i32: 1>} : vector<1x16x1xi32>
    %c0_15 = arith.constant 0 : index
    %c0_16 = arith.constant 0 : index
    %c0_17 = arith.constant 0 : index
    %28 = vector.load %arg2[%c0_15, %c0_16, %c0_17] : memref<1x1x1xi32, #tpu.memory_space<vmem>>, vector<1x1x1xi32>
    %29 = vector.broadcast %28 : vector<1x1x1xi32> to vector<1x16x1xi32>
    %30 = arith.cmpi sge, %27, %29 : vector<1x16x1xi32>
    %cst_18 = arith.constant -3.275200e+04 : f32
    %31 = vector.shape_cast %30 : vector<1x16x1xi1> to vector<1x16x1xi1>
    %32 = vector.broadcast %31 : vector<1x16x1xi1> to vector<1x16x128xi1>
    %33 = vector.broadcast %cst_18 : f32 to vector<1x16x128xf32>
    %34 = arith.select %32, %33, %26 : vector<1x16x128xi1>, vector<1x16x128xf32>
    %cst_19 = arith.constant dense<0xFF800000> : vector<1x128xf32>
    %35 = vector.multi_reduction <maximumf>, %34, %cst_19 [1] : vector<1x16x128xf32> to vector<1x128xf32>
    %36 = vector.shape_cast %35 : vector<1x128xf32> to vector<1x1x128xf32>
    %37 = vector.broadcast %36 : vector<1x1x128xf32> to vector<1x16x128xf32>
    %38 = arith.subf %34, %37 : vector<1x16x128xf32>
    %39 = math.exp %38 : vector<1x16x128xf32>
    %cst_20 = arith.constant dense<0.000000e+00> : vector<1x128xf32>
    %40 = vector.multi_reduction <add>, %39, %cst_20 [1] : vector<1x16x128xf32> to vector<1x128xf32>
    %41 = vector.shape_cast %40 : vector<1x128xf32> to vector<1x1x128xf32>
    %42 = arith.extf %0 : vector<1x16x128xbf16> to vector<1x16x128xf32>
    %43 = arith.mulf %42, %39 : vector<1x16x128xf32>
    %cst_21 = arith.constant dense<0.000000e+00> : vector<1x128xf32>
    %44 = vector.multi_reduction <add>, %43, %cst_21 [1] : vector<1x16x128xf32> to vector<1x128xf32>
    %45 = vector.shape_cast %44 : vector<1x128xf32> to vector<1x1x128xf32>
    %46 = arith.divf %45, %41 : vector<1x1x128xf32>
    %c0_22 = arith.constant 0 : index
    %c0_23 = arith.constant 0 : index
    %c0_24 = arith.constant 0 : index
    %47 = vector.load %arg7[%c0_22, %c0_23, %c0_24] : memref<1x1x128xf32, #tpu.memory_space<vmem>>, vector<1x1x128xf32>
    tpu.vector_store %arg7[%c0_22, %c0_23, %c0_24], %46 {strides = array<i32>} : memref<1x1x128xf32, #tpu.memory_space<vmem>>, vector<1x1x128xf32>,
    return
  }
  func.func @transform_0(%arg0: i32) -> (i32, i32, i32) {
    %c0_i32 = arith.constant 0 : i32
    %c0_i32_0 = arith.constant 0 : i32
    %c0_i32_1 = arith.constant 0 : i32
    return %arg0, %c0_i32, %c0_i32_0 : i32, i32, i32
  }
  func.func @transform_1(%arg0: i32) -> (i32, i32, i32) {
    %c0_i32 = arith.constant 0 : i32
    %c0_i32_0 = arith.constant 0 : i32
    %c0_i32_1 = arith.constant 0 : i32
    return %arg0, %c0_i32, %c0_i32_0 : i32, i32, i32
  }
  func.func @transform_2(%arg0: i32) -> (i32, i32) {
    %c0_i32 = arith.constant 0 : i32
    %c0_i32_0 = arith.constant 0 : i32
    %c0_i32_1 = arith.constant 0 : i32
    return %c0_i32, %c0_i32_0 : i32, i32
  }
  func.func @transform_3(%arg0: i32) -> (i32, i32) {
    %c0_i32 = arith.constant 0 : i32
    %c0_i32_0 = arith.constant 0 : i32
    %c0_i32_1 = arith.constant 0 : i32
    return %c0_i32, %c0_i32_0 : i32, i32
  }
  func.func @transform_4(%arg0: i32) -> (i32, i32) {
    %c0_i32 = arith.constant 0 : i32
    %c0_i32_0 = arith.constant 0 : i32
    %c0_i32_1 = arith.constant 0 : i32
    return %c0_i32, %c0_i32_0 : i32, i32
  }
  func.func @transform_5(%arg0: i32) -> (i32, i32) {
    %c0_i32 = arith.constant 0 : i32
    %c0_i32_0 = arith.constant 0 : i32
    %c0_i32_1 = arith.constant 0 : i32
    return %c0_i32, %c0_i32_0 : i32, i32
  }
  func.func @transform_6(%arg0: i32) -> (i32, i32, i32) {
    %c0_i32 = arith.constant 0 : i32
    %c0_i32_0 = arith.constant 0 : i32
    %c0_i32_1 = arith.constant 0 : i32
    return %arg0, %c0_i32, %c0_i32_0 : i32, i32, i32
  }
}

module attributes {stable_mosaic.version = 11 : i64} {
  func.func @_genpool_kernel(%arg0: i32, %arg1: memref<1x16x128xbf16, #tpu.memory_space<vmem>>, %arg2: memref<1x1x1xi32, #tpu.memory_space<vmem>>, %arg3: memref<128x128xbf16, #tpu.memory_space<vmem>>, %arg4: memref<1x128xf32, #tpu.memory_space<vmem>>, %arg5: memref<128x128xbf16, #tpu.memory_space<vmem>>, %arg6: memref<1x128xf32, #tpu.memory_space<vmem>>, %arg7: memref<1x1x128xf32, #tpu.memory_space<vmem>>) attributes {dimension_semantics = [#tpu.dimension_semantics<parallel>], iteration_bounds = array<i64: 2>, scalar_prefetch = 0 : i64, scratch_operands = 0 : i64, tpu.core_type = #tpu.core_type<tc>, window_params = [{transform_indices = @transform_0, window_bounds = array<i64: 1, 16, 128>}, {transform_indices = @transform_1, window_bounds = array<i64: 1, 1, 1>}, {pipeline_mode = #tpu.pipeline_mode<synchronous>, transform_indices = @transform_2, window_bounds = array<i64: 128, 128>}, {pipeline_mode = #tpu.pipeline_mode<synchronous>, transform_indices = @transform_3, window_bounds = array<i64: 1, 128>}, {pipeline_mode = #tpu.pipeline_mode<synchronous>, transform_indices = @transform_4, window_bounds = array<i64: 128, 128>}, {pipeline_mode = #tpu.pipeline_mode<synchronous>, transform_indices = @transform_5, window_bounds = array<i64: 1, 128>}, {transform_indices = @transform_6, window_bounds = array<i64: 1, 1, 128>}]} {
    %c0 = arith.constant 0 : index
    %c0_0 = arith.constant 0 : index
    %c0_1 = arith.constant 0 : index
    %0 = vector.load %arg1[%c0, %c0_0, %c0_1] : memref<1x16x128xbf16, #tpu.memory_space<vmem>>, vector<1x16x128xbf16>
    %1 = vector.shape_cast %0 : vector<1x16x128xbf16> to vector<16x128xbf16>
    %c0_2 = arith.constant 0 : index
    %c0_3 = arith.constant 0 : index
    %2 = vector.load %arg3[%c0_2, %c0_3] : memref<128x128xbf16, #tpu.memory_space<vmem>>, vector<128x128xbf16>
    %cst = arith.constant dense<0.000000e+00> : vector<16x128xf32>
    %3 = tpu.matmul %1, %2, %cst {dimension_numbers = #tpu.dot_dimension_numbers<[1], [0], [0], [1], [0, 0, 1, 1], [], []>} : vector<16x128xbf16>, vector<128x128xbf16>, vector<16x128xf32> -> vector<16x128xf32>
    %c0_4 = arith.constant 0 : index
    %c0_5 = arith.constant 0 : index
    %4 = vector.load %arg4[%c0_4, %c0_5] : memref<1x128xf32, #tpu.memory_space<vmem>>, vector<1x128xf32>
    %5 = vector.broadcast %4 : vector<1x128xf32> to vector<16x128xf32>
    %6 = arith.addf %3, %5 : vector<16x128xf32>
    %cst_6 = arith.constant 5.000000e-01 : f32
    %7 = vector.broadcast %cst_6 : f32 to vector<16x128xf32>
    %8 = arith.mulf %7, %6 : vector<16x128xf32>
    %9 = arith.mulf %6, %6 : vector<16x128xf32>
    %10 = arith.mulf %9, %6 : vector<16x128xf32>
    %cst_7 = arith.constant 4.471500e-02 : f32
    %11 = vector.broadcast %cst_7 : f32 to vector<16x128xf32>
    %12 = arith.mulf %11, %10 : vector<16x128xf32>
    %13 = arith.addf %6, %12 : vector<16x128xf32>
    %cst_8 = arith.constant 0.797884583 : f32
    %14 = vector.broadcast %cst_8 : f32 to vector<16x128xf32>
    %15 = arith.mulf %14, %13 : vector<16x128xf32>
    %16 = math.tanh %15 : vector<16x128xf32>
    %cst_9 = arith.constant 1.000000e+00 : f32
    %17 = vector.broadcast %cst_9 : f32 to vector<16x128xf32>
    %18 = arith.addf %17, %16 : vector<16x128xf32>
    %19 = arith.mulf %8, %18 : vector<16x128xf32>
    %20 = arith.truncf %19 : vector<16x128xf32> to vector<16x128xbf16>
    %c0_10 = arith.constant 0 : index
    %c0_11 = arith.constant 0 : index
    %21 = vector.load %arg5[%c0_10, %c0_11] : memref<128x128xbf16, #tpu.memory_space<vmem>>, vector<128x128xbf16>
    %cst_12 = arith.constant dense<0.000000e+00> : vector<16x128xf32>
    %22 = tpu.matmul %20, %21, %cst_12 {dimension_numbers = #tpu.dot_dimension_numbers<[1], [0], [0], [1], [0, 0, 1, 1], [], []>} : vector<16x128xbf16>, vector<128x128xbf16>, vector<16x128xf32> -> vector<16x128xf32>
    %c0_13 = arith.constant 0 : index
    %c0_14 = arith.constant 0 : index
    %23 = vector.load %arg6[%c0_13, %c0_14] : memref<1x128xf32, #tpu.memory_space<vmem>>, vector<1x128xf32>
    %24 = vector.broadcast %23 : vector<1x128xf32> to vector<16x128xf32>
    %25 = arith.addf %22, %24 : vector<16x128xf32>
    %26 = vector.shape_cast %25 : vector<16x128xf32> to vector<1x16x128xf32>
    %27 = tpu.iota {dimensions = array<i32: 1>} : vector<1x16x1xi32>
    %c0_15 = arith.constant 0 : index
    %c0_16 = arith.constant 0 : index
    %c0_17 = arith.constant 0 : index
    %28 = vector.load %arg2[%c0_15, %c0_16, %c0_17] : memref<1x1x1xi32, #tpu.memory_space<vmem>>, vector<1x1x1xi32>
    %29 = vector.broadcast %28 : vector<1x1x1xi32> to vector<1x16x1xi32>
    %30 = arith.cmpi sge, %27, %29 : vector<1x16x1xi32>
    %cst_18 = arith.constant -3.275200e+04 : f32
    %31 = vector.shape_cast %30 : vector<1x16x1xi1> to vector<1x16x1xi1>
    %32 = vector.broadcast %31 : vector<1x16x1xi1> to vector<1x16x128xi1>
    %33 = vector.broadcast %cst_18 : f32 to vector<1x16x128xf32>
    %34 = arith.select %32, %33, %26 : vector<1x16x128xi1>, vector<1x16x128xf32>
    %cst_19 = arith.constant dense<0xFF800000> : vector<1x128xf32>
    %35 = vector.multi_reduction <maximumf>, %34, %cst_19 [1] : vector<1x16x128xf32> to vector<1x128xf32>
    %36 = vector.shape_cast %35 : vector<1x128xf32> to vector<1x1x128xf32>
    %37 = vector.broadcast %36 : vector<1x1x128xf32> to vector<1x16x128xf32>
    %38 = arith.subf %34, %37 : vector<1x16x128xf32>
    %39 = math.exp %38 : vector<1x16x128xf32>
    %cst_20 = arith.constant dense<0.000000e+00> : vector<1x128xf32>
    %40 = vector.multi_reduction <add>, %39, %cst_20 [1] : vector<1x16x128xf32> to vector<1x128xf32>
    %41 = vector.shape_cast %40 : vector<1x128xf32> to vector<1x1x128xf32>
    %42 = arith.extf %0 : vector<1x16x128xbf16> to vector<1x16x128xf32>
    %43 = arith.mulf %42, %39 : vector<1x16x128xf32>
    %cst_21 = arith.constant dense<0.000000e+00> : vector<1x128xf32>
    %44 = vector.multi_reduction <add>, %43, %cst_21 [1] : vector<1x16x128xf32> to vector<1x128xf32>
    %45 = vector.shape_cast %44 : vector<1x128xf32> to vector<1x1x128xf32>
    %46 = arith.divf %45, %41 : vector<1x1x128xf32>
    %c0_22 = arith.constant 0 : index
    %c0_23 = arith.constant 0 : index
    %c0_24 = arith.constant 0 : index
    %47 = vector.load %arg7[%c0_22, %c0_23, %c0_24] : memref<1x1x128xf32, #tpu.memory_space<vmem>>, vector<1x1x128xf32>
    tpu.vector_store %arg7[%c0_22, %c0_23, %c0_24], %46 {strides = array<i32>} : memref<1x1x128xf32, #tpu.memory_space<vmem>>, vector<1x1x128xf32>,
    return
  }
  func.func @transform_0(%arg0: i32) -> (i32, i32, i32) {
    %c0_i32 = arith.constant 0 : i32
    %c0_i32_0 = arith.constant 0 : i32
    %c0_i32_1 = arith.constant 0 : i32
    return %arg0, %c0_i32, %c0_i32_0 : i32, i32, i32
  }
  func.func @transform_1(%arg0: i32) -> (i32, i32, i32) {
    %c0_i32 = arith.constant 0 : i32
    %c0_i32_0 = arith.constant 0 : i32
    %c0_i32_1 = arith.constant 0 : i32
    return %arg0, %c0_i32, %c0_i32_0 : i32, i32, i32
  }
  func.func @transform_2(%arg0: i32) -> (i32, i32) {
    %c0_i32 = arith.constant 0 : i32
    %c0_i32_0 = arith.constant 0 : i32
    %c0_i32_1 = arith.constant 0 : i32
    return %c0_i32, %c0_i32_0 : i32, i32
  }
  func.func @transform_3(%arg0: i32) -> (i32, i32) {
    %c0_i32 = arith.constant 0 : i32
    %c0_i32_0 = arith.constant 0 : i32
    %c0_i32_1 = arith.constant 0 : i32
    return %c0_i32, %c0_i32_0 : i32, i32
  }
  func.func @transform_4(%arg0: i32) -> (i32, i32) {
    %c0_i32 = arith.constant 0 : i32
    %c0_i32_0 = arith.constant 0 : i32
    %c0_i32_1 = arith.constant 0 : i32
    return %c0_i32, %c0_i32_0 : i32, i32
  }
  func.func @transform_5(%arg0: i32) -> (i32, i32) {
    %c0_i32 = arith.constant 0 : i32
    %c0_i32_0 = arith.constant 0 : i32
    %c0_i32_1 = arith.constant 0 : i32
    return %c0_i32, %c0_i32_0 : i32, i32
  }
  func.func @transform_6(%arg0: i32) -> (i32, i32, i32) {
    %c0_i32 = arith.constant 0 : i32
    %c0_i32_0 = arith.constant 0 : i32
    %c0_i32_1 = arith.constant 0 : i32
    return %arg0, %c0_i32, %c0_i32_0 : i32, i32, i32
  }
}

</mosaic_0001>

<bundles_post_ra>
// kernel: tpu_custom_call.1
= control target key start
LH: loop header
LB: loop body
LE: loop exit
PB: predicated region body
PF: predicated region fallthrough
CT: control target
= control target key end

     0   :  { %11 = vsyncpa [#allocation3], 0  ;;  %s1385_s0 = inlined_call_operand.hbm [shape: bf16[2,16,128], index: 0, kind: input, shape index: {}]   ;;  %s1386_s1 = inlined_call_operand.vmem [shape: s32[2,1,1], index: 1, kind: input, shape index: {}]   ;;  %s1387_s2 = inlined_call_operand.hbm [shape: bf16[128,128], index: 2, kind: input, shape index: {}]   ;;  %s1388_s3 = inlined_call_operand.vmem [shape: f32[1,128], index: 3, kind: input, shape index: {}]   ;;  %s1389_s4 = inlined_call_operand.hbm [shape: bf16[128,128], index: 4, kind: input, shape index: {}]   ;;  %s1390_s5 = inlined_call_operand.vmem [shape: f32[1,128], index: 5, kind: input, shape index: {}]   ;;  %s1391_s6 = inlined_call_operand.hbm [shape: f32[2,1,128], index: 6, kind: output, shape index: {}]  }
   0x1   :  { %13 = vsyncpa [#allocation3 + $0x1], 0 }
   0x2   :  { %14 = vsyncpa [#allocation6], 0 }
   0x3   :  { %15 = vsyncpa [#allocation4], 0 }
   0x4   :  { %17 = vsyncpa [#allocation4 + $0x1], 0  ;;  %s1124_s21 = smov 0   ;;  %s1126_s22 = smov 0  }
   0x5   :  { %s1128_s23 = smov 0   ;;  %s1130_s24 = smov 0  }
   0x6 LB: > { %s1145_s25 = sadd.s32 4294967295, %s1078_s24   ;;  %s727_s26 = sadd.s32 4294967294, %s1078_s24   ;;  %s1078_s24 = sphi %s1130_s24, %s1411_s24   ;;  %s1074_s23 = sphi %s1128_s23, %s1410_s23   ;;  %s1070_s22 = sphi %s1126_s22, %s1409_s22   ;;  %s1066_s21 = sphi %s1124_s21, %s1408_s21  }
   0x7   : > { %p43_p0 = scmp.ne.s32.totalorder %s1070_s22, %s1066_s21  ;;  %p1392_p1 = scmp.eq.s32.totalorder %s1145_s25, 0 }
   0x8   : > { %p183_p3 = scmp.eq.s32.totalorder %s727_s26, 1  ;;  %p728_p5 = scmp.ge.s32.totalorder %s1078_s24, 1 }
   0x9   : > { %p1154_p4 = por %p1392_p1, %p43_p0  ;;  %p190_p7 = scmp.lt.s32.totalorder %s1078_s24, 3 }
   0xa   : > { %p1159_p6 = por %p183_p3, %p43_p0  ;;  %s1080_s30 = smov [#allocation5]  }
   0xb   : > { %s1395_s27 = scalar_select %p1154_p4, 1, 0 }
   0xc   : > { %s1396_s28 = scalar_select %p1159_p6, 1, 0 }
   0xd   : > { %p1164_p8 = pnand %p728_p5, %p190_p7  ;;  %s202_s7 = sshll.u32 %s1080_s30, 4  ;;  %s1168_s7 = int_to_ptr.vmem [resolvable:$true] %s202_s7 }
   0xe   : > { %s1081_s9 = smov [#allocation7]   ;;  %s922_s13 = scalar_lea.hbm %s1387_s2, 1024 }
   0xf   : > { %p833_p9 = pneg %p1164_p8  ;;  %s218_s10 = sshll.u32 %s1081_s9, 4  ;;  %s1179_s10 = int_to_ptr.vmem [resolvable:$true] %s218_s10 }
  0x10   : > { %p923_p12 = scmp.ne.s32.totalorder %s1387_s2, %s922_s13  ;;  %p929_p5 = scmp.lt.u32.totalorder %s922_s13, %s1387_s2 }
  0x11   : > { %p1175_p11 = pnand %p833_p9, %p1392_p1 }
  0x13   : > { %p924_p13 = pneg %p1175_p11 }
  0x15   : > { %p925_p0 = pnand %p924_p13, %p923_p12 }
  0x17   : > { %p926_p3 = pneg %p925_p0 }
  0x19   : > { %p931_p7 = pnand %p929_p5, %p926_p3 }
  0x1b   : > { %934 = shalt.err (!%p931_p7)
}
  0x1c   : > { %s935_s18 = scalar_lea.vmem %s1168_s7, 1024  ;;  %p943_p2 = scmp.lt.s32.totalorder %s1168_s7, %s1168_s7 }
  0x1d   : > { %p936_p9 = scmp.ne.s32.totalorder %s1168_s7, %s935_s18  ;;  %p944_p12 = scmp.lt.s32.totalorder %s935_s18, %s935_s18 }
  0x1f   : > { %p938_p10 = pnand %p936_p9, %p924_p13  ;;  %p945_p0 = por %p944_p12, %p943_p2 }
  0x21   : > { %p939_p1 = pneg %p938_p10 }
  0x23   : > { %p946_p6 = pnand %p945_p0, %p939_p1 }
  0x25   : > { %949 = shalt.err (!%p946_p6)
}
  0x26   : > { %s1082_s19 = smov 64   ;;  %s1083_s20 = smov 4  }
  0x27   : > { %836 = dma.hbm_to_vmem [thread:$0]  (!%p1175_p11), %s1387_s2, 1024, %s1168_s7, [#allocation6], %s1082_s19, %s1082_s19, %s1083_s20  }
  0x28   : > { %s950_s12 = scalar_lea.hbm %s1389_s4, 1024 }
  0x29   : > { %p951_p1 = scmp.ne.s32.totalorder %s1389_s4, %s950_s12  ;;  %p957_p10 = scmp.lt.u32.totalorder %s950_s12, %s1389_s4 }
  0x2b   : > { %p953_p2 = pnand %p951_p1, %p924_p13 }
  0x2d   : > { %p954_p6 = pneg %p953_p2 }
  0x2f   : > { %p959_p3 = pnand %p957_p10, %p954_p6 }
  0x31   : > { %962 = shalt.err (!%p959_p3)
}
  0x32   : > { %s963_s7 = scalar_lea.vmem %s1179_s10, 1024  ;;  %p971_p12 = scmp.lt.s32.totalorder %s1179_s10, %s1179_s10 }
  0x33   : > { %p964_p5 = scmp.ne.s32.totalorder %s1179_s10, %s963_s7  ;;  %p972_p0 = scmp.lt.s32.totalorder %s963_s7, %s963_s7 }
  0x35   : > { %p966_p7 = pnand %p964_p5, %p924_p13  ;;  %p973_p1 = por %p972_p0, %p971_p12 }
  0x37   : > { %p967_p9 = pneg %p966_p7 }
  0x39   : > { %p974_p2 = pnand %p973_p1, %p967_p9 }
  0x3b   : > { %977 = shalt.err (!%p974_p2)
}
  0x3c   : > { %839 = dma.hbm_to_vmem [thread:$0]  (!%p1175_p11), %s1389_s4, 1024, %s1179_s10, [#allocation6], %s1082_s19, %s1082_s19, %s1083_s20  }
  0x3d   : > { %s1240_s8 = sadd.s32 1, %s1078_s24   ;;  %s30_s26 = sadd.s32 1, %s1074_s23 }
  0x3e   : > { %s27_s30 = ssub.s32 %s1078_s24, %s1240_s8  ;;  %p37_p13 = scmp.ne.s32.totalorder %s1074_s23, %s1070_s22 }
  0x3f   : > { %p28_p6 = scmp.eq.s32.totalorder %s27_s30, 0  ;;  %p38_p10 = scmp.eq.s32.totalorder %s1078_s24, 0 }
  0x40   : > { %p1399_p3 = scmp.eq.s32.totalorder %s1145_s25, 1  ;;  %p850_p7 = scmp.lt.s32.totalorder %s1078_s24, 2 }
  0x41   : > { %s1256_s11 = scalar_select %p28_p6, %s1074_s23, %s30_s26  }
  0x42   : > { %p1250_p5 = por %p1399_p3, %p37_p13  ;;  %p39_p9 = por %p38_p10, %p37_p13 }
  0x43   : > { %s235_s12 = sand.u32 1, %s1074_s23   ;;  %s762_s10 = sshll.u32 %s1078_s24, 7 }
  0x44   : > { %s1400_s9 = scalar_select %p1250_p5, 1, 0 }
  0x45   : > { %s732_s13 = sshll.u32 %s235_s12, 3  ;;  %s1263_s16 = scalar_lea.hbm %s1385_s0, %s762_s10 }
  0x46   : > { %s239_s7 = scalar_lea.vmem [#allocation2], %s732_s13  ;;  %p1267_p11 = pnand %p850_p7, %p39_p9 }
  0x47   : > { %s246_s17 = sshll.u32 %s239_s7, 4  ;;  %s1271_s26 = scalar_lea.sflag [#allocation3], %s235_s12  ;;  %s1265_s17 = int_to_ptr.vmem [resolvable:$true] %s246_s17 }
  0x48   : > { %s978_s30 = scalar_lea.hbm %s1263_s16, 128  ;;  %p980_p0 = pneg %p1267_p11 }
  0x49   : > { %p979_p12 = scmp.ne.s32.totalorder %s1263_s16, %s978_s30  ;;  %s983_s14 = scalar_lea.hbm %s1385_s0, 256 }
  0x4a   : > { %p984_p13 = scmp.lt.u32.totalorder %s1263_s16, %s1385_s0  ;;  %p985_p6 = scmp.lt.u32.totalorder %s983_s14, %s978_s30 }
  0x4b   : > { %p981_p1 = pnand %p980_p0, %p979_p12  ;;  %p987_p3 = scmp.lt.u32.totalorder %s978_s30, %s1263_s16 }
  0x4c   : > { %p986_p10 = por %p985_p6, %p984_p13 }
  0x4d   : > { %p982_p2 = pneg %p981_p1 }
  0x4e   : > { %p988_p7 = por %p987_p3, %p986_p10 }
  0x50   : > { %p989_p9 = pnand %p988_p7, %p982_p2 }
  0x52   : > { %992 = shalt.err (!%p989_p9)
}
  0x53   : > { %s993_s12 = scalar_lea.vmem %s1265_s17, 128  ;;  %s1084_s13 = smov [#allocation2]  }
  0x54   : > { %p994_p12 = scmp.ne.s32.totalorder %s1265_s17, %s993_s12  ;;  %s998_s10 = sshll.u32 %s1084_s13, 4  ;;  %s999_s10 = int_to_ptr.vmem [resolvable:$false] %s998_s10 }
  0x55   : > { %s1000_s15 = scalar_lea.vmem %s999_s10, 256  ;;  %p1001_p4 = scmp.lt.s32.totalorder %s1265_s17, %s999_s10 }
  0x56   : > { %p996_p1 = pnand %p994_p12, %p980_p0  ;;  %p1002_p13 = scmp.lt.s32.totalorder %s1000_s15, %s993_s12 }
  0x58   : > { %p997_p5 = pneg %p996_p1  ;;  %p1003_p6 = por %p1002_p13, %p1001_p4 }
  0x5a   : > { %p1004_p10 = pnand %p1003_p6, %p997_p5 }
  0x5c   : > { %1007 = shalt.err (!%p1004_p10)
}
  0x5d   : > { %843 = dma.hbm_to_vmem [thread:$0]  (!%p1267_p11), %s1263_s16, 128, %s1265_s17, %s1271_s26, %s1082_s19, %s1082_s19, %s1083_s20  }
  0x5e   : > { %264 = sbr.rel (%p1164_p8) target bundleno = 670 (0x29e), region = 44  ;;  %s1305_s30 = sand.u32 (!%p1164_p8), 1, %s1070_s22  }
  0x5f   : > { %s736_s14 = sshll.u32 (!%p1164_p8), %s1305_s30, 3  ;;  %s267_s7 = scalar_lea.sflag (!%p1164_p8), [#allocation3], %s1305_s30 }
  0x60   : > { %s1309_s12 = scalar_lea.vmem (!%p1164_p8), [#allocation2], %s736_s14  ;;  %p1402_p4 = scmp.ne.s32.totalorder (!%p1164_p8), %s1395_s27, 0 }
  0x65   : > { %1053 = dma.done.wait (%p1402_p4), %s267_s7, 128  }
  0x66   : > { %1055 = vsyncadd (%p1402_p4), %s267_s7, 4294967168  ;;  %p1403_p5 = scmp.eq.s32.totalorder %s1145_s25, 0 }
  0x68   : > { %1057 = dma.done.wait (%p1403_p5), [#allocation6], 2048   ;;  %p1404_p8 = pmov %p1403_p5 }
  0x69   : > { %v1085_v0 = vmov 0.0   ;;  %vm1086_vm0 = vmmov 0   ;;  %v894_v1 = vld [vmem:[#allocation5] sm:$0xff]   ;;  %v895_v2 = vld [vmem:[#allocation5 + $0x8] sm:$0xff]   ;;  %v896_v3 = vld [vmem:[#allocation5 + $0x10] sm:$0xff]   ;;  %p309_p11 = scmp.lt.s32.totalorder %s1145_s25, 1  ;;  %v564_v18 = vlaneseq }
  0x6a   : > { %1059 = vsyncadd (%p1404_p8), [#allocation6], 4294965248  ;;  %781 = vmatprep.subr.bf16.mxu0 %v1085_v0  ;;  %797 = vmatprep.mubr.msk.bf16.mxu0 %vm1086_vm0, %v1085_v0  ;;  %v897_v4 = vld [vmem:[#allocation5 + $0x18] sm:$0xff]   ;;  %v898_v5 = vld [vmem:[#allocation5 + $0x20] sm:$0xff]   ;;  %v1087_v19 = vmov 0   ;;  %s759_s13 = sshll.u32 %s1145_s25, 4 }
  0x6b   : > { %801 = vmatprep.subr.bf16.mxu1 %v1085_v0  ;;  %817 = vmatprep.mubr.msk.bf16.mxu1 %vm1086_vm0, %v1085_v0  ;;  %v899_v6 = vld [vmem:[#allocation5 + $0x28] sm:$0xff]   ;;  %v900_v7 = vld [vmem:[#allocation5 + $0x30] sm:$0xff]   ;;  %v901_v8 = vld [vmem:[#allocation5 + $0x38] sm:$0xff]   ;;  %s310_s27 = scalar_select %p309_p11, %s1145_s25, 1  ;;  %v565_v20 = vshrl.u32 %v564_v18, 7 }
  0x6c   : > { %782 = vmatpush3.bf16.msra.mxu0 %v894_v1  ;;  %v1320_v9 = vld [vmem:[%s1309_s12] sm:$0xff]   ;;  %v903_v10 = vld [vmem:[#allocation7] sm:$0xff]   ;;  %v904_v11 = vld [vmem:[#allocation7 + $0x8] sm:$0xff]   ;;  %893 = vset.pattern.permute.xlu0 %v1087_v19  ;;  %s308_s10 = scalar_lea.vmem [#allocation8], %s1305_s30  ;;  %s1341_s12 = scalar_lea.hbm %s1391_s6, %s759_s13 }
  0x6d   : > { %783 = vmatprep.subr.bf16.mxu0 %v1085_v0  ;;  %802 = vmatpush3.bf16.msra.mxu1 %v903_v10  ;;  %v905_v12 = vld [vmem:[#allocation7 + $0x10] sm:$0xff]   ;;  %v906_v13 = vld [vmem:[#allocation7 + $0x18] sm:$0xff]   ;;  %v907_v14 = vld [vmem:[#allocation7 + $0x20] sm:$0xff]   ;;  %s311_s20 = scalar_lea.vmem %s1386_s1, %s310_s27  ;;  %v566_v21 = vadd.s32 8, %v565_v20  ;;  %v606_v10 = vunpack.c.l.bf16 %v1320_v9  ;;  %s633_s15 = sshll.u32 %s308_s10, 4  ;;  %s1343_s15 = int_to_ptr.vmem [resolvable:$true] %s633_s15 }
  0x6e   : > { %803 = vmatprep.subr.bf16.mxu1 %v1085_v0  ;;  %v908_v15 = vld [vmem:[#allocation7 + $0x28] sm:$0xff]   ;;  %v909_v16 = vld [vmem:[#allocation7 + $0x30] sm:$0xff]   ;;  %v910_v17 = vld [vmem:[#allocation7 + $0x38] sm:$0xff]   ;;  %s621_s27 = scalar_lea.sflag [#allocation4], %s1305_s30  ;;  %s1008_s29 = scalar_lea.vmem %s1343_s15, 16 }
  0x6f   : > { %v758_v22 = vld [vmem:[%s311_s20] ss:$0 sm:$0xff]  ;;  %p1009_p0 = scmp.ne.s32.totalorder %s1343_s15, %s1008_s29  ;;  %p1405_p2 = scmp.ne.s32.totalorder %s1400_s9, 0 }
  0x70   : > { %784 = vmatpush3.bf16.msra.mxu0 %v895_v2  ;;  %vm572_vm1 = vcmp.ge.s32.totalorder %v565_v20, %v758_v22  ;;  %vm573_vm2 = vcmp.ge.s32.totalorder %v566_v21, %v758_v22  ;;  %v739_v25 = vld [vmem:[%s1388_s3] ss:$0 sm:$0xff]  ;;  %s1088_s25 = smov [#allocation8]  }
  0x71   : > { %785 = vmatprep.subr.bf16.mxu0 %v1085_v0  ;;  %804 = vmatpush3.bf16.msra.mxu1 %v904_v11  ;;  %v574_v23 = vsel %vm572_vm1, 1, %v1087_v19  ;;  %v575_v24 = vsel %vm573_vm2, 1, %v1087_v19  ;;  %v749_v52 = vld [vmem:[%s1390_s5] ss:$0 sm:$0xff]  ;;  %v607_v11 = vunpack.c.h.bf16 %v1320_v9  ;;  %p1010_p3 = pnand %p1009_p0, %p1405_p2  ;;  %s1012_s19 = sshll.u32 %s1088_s25, 4  ;;  %s1013_s19 = int_to_ptr.vmem [resolvable:$false] %s1012_s19 }
  0x72   : > { %805 = vmatprep.subr.bf16.mxu1 %v1085_v0  ;;  %577 = vperm.xlu0 %893, %v574_v23   ;;  %s1014_s20 = scalar_lea.vmem %s1013_s19, 32  ;;  %p1015_p9 = scmp.lt.s32.totalorder %s1343_s15, %s1013_s19 }
  0x73   : > { %p1011_p7 = pneg %p1010_p3  ;;  %p1016_p12 = scmp.lt.s32.totalorder %s1014_s20, %s1008_s29 }
  0x74   : > { %786 = vmatpush3.bf16.msra.mxu0 %v896_v3 }
  0x75   : > { %787 = vmatprep.subr.bf16.mxu0 %v1085_v0  ;;  %806 = vmatpush3.bf16.msra.mxu1 %v905_v12  ;;  %p1017_p1 = por %p1016_p12, %p1015_p9 }
  0x76   : > { %807 = vmatprep.subr.bf16.mxu1 %v1085_v0  ;;  %580 = vperm.xlu0 %893, %v575_v24  }
  0x77   : > { %p1018_p13 = pnand %p1017_p1, %p1011_p7 }
  0x78   : > { %788 = vmatpush3.bf16.msra.mxu0 %v897_v4 }
  0x79   : > { %789 = vmatprep.subr.bf16.mxu0 %v1085_v0  ;;  %808 = vmatpush3.bf16.msra.mxu1 %v906_v13 }
  0x7a   : > { %809 = vmatprep.subr.bf16.mxu1 %v1085_v0 }
  0x7c   : > { %790 = vmatpush3.bf16.msra.mxu0 %v898_v5 }
  0x7d   : > { %791 = vmatprep.subr.bf16.mxu0 %v1085_v0  ;;  %810 = vmatpush3.bf16.msra.mxu1 %v907_v14 }
  0x7e   : > { %811 = vmatprep.subr.bf16.mxu1 %v1085_v0 }
  0x80   : > { %792 = vmatpush3.bf16.msra.mxu0 %v899_v6 }
  0x81   : > { %793 = vmatprep.subr.bf16.mxu0 %v1085_v0  ;;  %812 = vmatpush3.bf16.msra.mxu1 %v908_v15 }
  0x82   : > { %813 = vmatprep.subr.bf16.mxu1 %v1085_v0 }
  0x84   : > { %794 = vmatpush3.bf16.msra.mxu0 %v900_v7 }
  0x85   : > { %795 = vmatprep.subr.bf16.mxu0 %v1085_v0  ;;  %814 = vmatpush3.bf16.msra.mxu1 %v909_v16 }
  0x86   : > { %815 = vmatprep.subr.bf16.mxu1 %v1085_v0 }
  0x88   : > { %796 = vmatpush3.bf16.msra.mxu0 %v901_v8 }
  0x89   : > { %816 = vmatpush3.bf16.msra.mxu1 %v910_v17 }
  0x8b   : > { %798 = vmatmul.mubr.bf16.vlgmr.msra.gmra.mrb[0].mxu0 %v1320_v9 }
  0xf1   : > { %v578_v51 = vpop.permute.xlu0 %577 }
  0xf2   : > { %vm582_vm3 = vcmp.eq.s32.totalorder %v578_v51, 1 }
  0xf5   : > { %v581_v54 = vpop.permute.xlu0 %580 }
  0xf6   : > { %vm583_vm4 = vcmp.eq.s32.totalorder %v581_v54, 1 }
 0x15e   : > { %v426_v26 = vpop.f32.mrb[0].mxu0 }
 0x15f   : > { %v427_v27 = vadd.f32 %v739_v25, %v426_v26  ;;  %v799_v28 = vpop.f32.mrb[1].mxu0 }
 0x160   : > { %v429_v29 = vpop.f32.mrb[2].mxu0 }
 0x161   : > { %v435_v30 = vmul.f32 %v427_v27, %v427_v27  ;;  %v430_v31 = vadd.f32 %v739_v25, %v429_v29  ;;  %v800_v32 = vpop.f32.mrb[3].mxu0  ;;  %v433_v45 = vmul.f32 0.5, %v427_v27 }
 0x163   : > { %v437_v33 = vmul.f32 %v435_v30, %v427_v27  ;;  %v436_v34 = vmul.f32 %v430_v31, %v430_v31  ;;  %v434_v46 = vmul.f32 0.5, %v430_v31 }
 0x165   : > { %v439_v35 = vmul.f32 0.044715, %v437_v33  ;;  %v438_v36 = vmul.f32 %v436_v34, %v430_v31 }
 0x167   : > { %v441_v37 = vadd.f32 %v439_v35, %v427_v27  ;;  %v440_v38 = vmul.f32 0.044715, %v438_v36 }
 0x169   : > { %v443_v39 = vmul.f32 0.7978846, %v441_v37  ;;  %v442_v40 = vadd.f32 %v440_v38, %v430_v31 }
 0x16b   : > { %912 = vtanh.f32 %v443_v39  ;;  %v444_v41 = vmul.f32 0.7978846, %v442_v40 }
 0x16d   : > { %914 = vtanh.f32 %v444_v41 }
 0x175   : > { %v913_v42 = vpop.eup %912 }
 0x176   : > { %v447_v43 = vadd.f32 1.0, %v913_v42 }
 0x177   : > { %v915_v44 = vpop.eup %914 }
 0x178   : > { %v448_v47 = vadd.f32 1.0, %v915_v44  ;;  %v449_v48 = vmul.f32 %v447_v43, %v433_v45 }
 0x17a   : > { %v450_v49 = vmul.f32 %v448_v47, %v434_v46 }
 0x17c   : > { %v451_v50 = vpack.c.bf16 %v450_v49, %v449_v48 }
 0x17e   : > { %818 = vmatmul.mubr.bf16.vlgmr.msra.gmra.mrb[0].mxu1 %v451_v50 }
 0x251   : > { %v557_v53 = vpop.f32.mrb[0].mxu1 }
 0x252   : > { %v558_v55 = vadd.f32 %v749_v52, %v557_v53  ;;  %v819_v56 = vpop.f32.mrb[1].mxu1 }
 0x253   : > { %v560_v57 = vpop.f32.mrb[2].mxu1 }
 0x254   : > { %v561_v58 = vadd.f32 %v749_v52, %v560_v57  ;;  %v820_v59 = vpop.f32.mrb[3].mxu1  ;;  %v584_v60 = vsel %vm582_vm3, -32752.0, %v558_v55 }
 0x256   : > { %v585_v61 = vsel %vm583_vm4, -32752.0, %v561_v58 }
 0x257   : > { %v586_v62 = vmax.f32 %v584_v60, %v585_v61 }
 0x259   : > { %v587_v63 = vrot.slane %v586_v62, 4 }
 0x25b   : > { %v588_v0 = vmax.f32 %v586_v62, %v587_v63 }
 0x25d   : > { %v589_v1 = vrot.slane %v588_v0, 2 }
 0x25f   : > { %v590_v2 = vmax.f32 %v588_v0, %v589_v1 }
 0x261   : > { %v591_v3 = vrot.slane %v590_v2, 1 }
 0x263   : > { %v592_v4 = vmax.f32 %v590_v2, %v591_v3 }
 0x265   : > { %v593_v5 = vsub.f32 %v584_v60, %v592_v4  ;;  %v594_v6 = vsub.f32 %v585_v61, %v592_v4 }
 0x267   : > { %v595_v7 = vmul.f32 1.442695, %v593_v5  ;;  %v597_v8 = vmul.f32 1.442695, %v594_v6 }
 0x269   : > { %916 = vpow2.f32 %v595_v7 }
 0x26a   : > { %918 = vpow2.f32 %v597_v8 }
 0x273   : > { %v917_v12 = vpop.eup %916 }
 0x274   : > { %v919_v13 = vpop.eup %918  ;;  %v608_v14 = vmul.f32 %v917_v12, %v606_v10 }
 0x275   : > { %v599_v15 = vadd.f32 %v919_v13, %v917_v12  ;;  %v609_v16 = vmul.f32 %v919_v13, %v607_v11 }
 0x277   : > { %v600_v17 = vrot.slane %v599_v15, 4  ;;  %v610_v18 = vadd.f32 %v609_v16, %v608_v14 }
 0x279   : > { %v601_v19 = vadd.f32 %v600_v17, %v599_v15  ;;  %v611_v20 = vrot.slane %v610_v18, 4 }
 0x27b   : > { %v602_v21 = vrot.slane %v601_v19, 2  ;;  %v612_v22 = vadd.f32 %v611_v20, %v610_v18 }
 0x27d   : > { %v603_v23 = vadd.f32 %v602_v21, %v601_v19  ;;  %v613_v25 = vrot.slane %v612_v22, 2 }
 0x27f   : > { %v604_v24 = vrot.slane %v603_v23, 1  ;;  %v614_v9 = vadd.f32 %v613_v25, %v612_v22 }
 0x281   : > { %v605_v26 = vadd.f32 %v604_v24, %v603_v23  ;;  %v615_v27 = vrot.slane %v614_v9, 1 }
 0x283   : > { %920 = vrcp.f32 %v605_v26  ;;  %v616_v28 = vadd.f32 %v615_v27, %v614_v9 }
 0x28d   : > { %v921_v29 = vpop.eup %920 }
 0x28e   : > { %v618_v30 = vmul.f32 %v921_v29, %v616_v28 }
 0x290   : > { %619 = vst [vmem:[%s308_s10] sm:$0x1] %v618_v30 }
 0x291   : > { %1021 = shalt.err (!%p1018_p13)
}
 0x292   : > { %s1022_s30 = scalar_lea.hbm %s1341_s12, 16  ;;  %s1026_s18 = scalar_lea.hbm %s1391_s6, 32 }
 0x293   : > { %p1023_p6 = scmp.ne.s32.totalorder %s1341_s12, %s1022_s30  ;;  %p1027_p5 = scmp.lt.u32.totalorder %s1341_s12, %s1391_s6 }
 0x294   : > { %p1028_p8 = scmp.lt.u32.totalorder %s1026_s18, %s1022_s30  ;;  %p1030_p0 = scmp.lt.u32.totalorder %s1022_s30, %s1341_s12 }
 0x295   : > { %p1024_p10 = pnand %p1023_p6, %p1405_p2 }
 0x296   : > { %p1029_p11 = por %p1028_p8, %p1027_p5 }
 0x297   : > { %p1025_p4 = pneg %p1024_p10 }
 0x298   : > { %p1031_p3 = por %p1030_p0, %p1029_p11 }
 0x29a   : > { %p1032_p7 = pnand %p1031_p3, %p1025_p4 }
 0x29c   : > { %1035 = shalt.err (!%p1032_p7)
}
 0x29d   : > { %831 = dma.vmem_to_hbm [thread:$0]  (%p1405_p2), %s1343_s15, 16, %s1341_s12, %s621_s27  }
 0x29e PF: > { %s645_s10 = sand.u32 1, %s1066_s21   ;;  %p1406_p9 = scmp.ne.s32.totalorder %s1396_s28, 0 }
 0x29f   : > { %p1407_p12 = scmp.ge.s32.totalorder %s1078_s24, 2  ;;  %s646_s14 = scalar_lea.sflag [#allocation4], %s645_s10 }
 0x2a1   : > { %p845_p1 = pnand %p1407_p12, %p1406_p9 }
 0x2a3   : > { %1061 = dma.done.wait (!%p845_p1), %s646_s14, 16  }
 0x2a4   : > { %1063 = vsyncadd (!%p845_p1), %s646_s14, 4294967280  ;;  %p20_p13 = scmp.ge.s32.totalorder %s1240_s8, 4   ;;  %s1408_s21 = smov %s1070_s22 }
 0x2a5   : > { %s1409_s22 = smov %s1074_s23  ;;  %s1410_s23 = smov %s1256_s11 }
 0x2a6   : > { %s1411_s24 = smov %s1240_s8  ;;  %22 = sbr.rel (!%p20_p13) target bundleno = 6 (0x6), region = 100 }
 0x2ad   :  { %650 = vsyncpa [#allocation3], 1 }
 0x2ae   :  { %652 = vsyncpa [#allocation3 + $0x1], 1 }
 0x2af   :  { %653 = vsyncpa [#allocation6], 1 }
 0x2b0   :  { %654 = vsyncpa [#allocation4], 1 }
 0x2b1   :  { %656 = vsyncpa [#allocation4 + $0x1], 1 }

// kernel: tpu_custom_call.1
= control target key start
LH: loop header
LB: loop body
LE: loop exit
PB: predicated region body
PF: predicated region fallthrough
CT: control target
= control target key end

     0   :  { %11 = vsyncpa [#allocation3], 0  ;;  %s1385_s0 = inlined_call_operand.hbm [shape: bf16[2,16,128], index: 0, kind: input, shape index: {}]   ;;  %s1386_s1 = inlined_call_operand.vmem [shape: s32[2,1,1], index: 1, kind: input, shape index: {}]   ;;  %s1387_s2 = inlined_call_operand.hbm [shape: bf16[128,128], index: 2, kind: input, shape index: {}]   ;;  %s1388_s3 = inlined_call_operand.vmem [shape: f32[1,128], index: 3, kind: input, shape index: {}]   ;;  %s1389_s4 = inlined_call_operand.hbm [shape: bf16[128,128], index: 4, kind: input, shape index: {}]   ;;  %s1390_s5 = inlined_call_operand.vmem [shape: f32[1,128], index: 5, kind: input, shape index: {}]   ;;  %s1391_s6 = inlined_call_operand.hbm [shape: f32[2,1,128], index: 6, kind: output, shape index: {}]  }
   0x1   :  { %13 = vsyncpa [#allocation3 + $0x1], 0 }
   0x2   :  { %14 = vsyncpa [#allocation6], 0 }
   0x3   :  { %15 = vsyncpa [#allocation4], 0 }
   0x4   :  { %17 = vsyncpa [#allocation4 + $0x1], 0  ;;  %s1124_s21 = smov 0   ;;  %s1126_s22 = smov 0  }
   0x5   :  { %s1128_s23 = smov 0   ;;  %s1130_s24 = smov 0  }
   0x6 LB: > { %s1145_s25 = sadd.s32 4294967295, %s1078_s24   ;;  %s727_s26 = sadd.s32 4294967294, %s1078_s24   ;;  %s1078_s24 = sphi %s1130_s24, %s1411_s24   ;;  %s1074_s23 = sphi %s1128_s23, %s1410_s23   ;;  %s1070_s22 = sphi %s1126_s22, %s1409_s22   ;;  %s1066_s21 = sphi %s1124_s21, %s1408_s21  }
   0x7   : > { %p43_p0 = scmp.ne.s32.totalorder %s1070_s22, %s1066_s21  ;;  %p1392_p1 = scmp.eq.s32.totalorder %s1145_s25, 0 }
   0x8   : > { %p183_p3 = scmp.eq.s32.totalorder %s727_s26, 1  ;;  %p728_p5 = scmp.ge.s32.totalorder %s1078_s24, 1 }
   0x9   : > { %p1154_p4 = por %p1392_p1, %p43_p0  ;;  %p190_p7 = scmp.lt.s32.totalorder %s1078_s24, 3 }
   0xa   : > { %p1159_p6 = por %p183_p3, %p43_p0  ;;  %s1080_s30 = smov [#allocation5]  }
   0xb   : > { %s1395_s27 = scalar_select %p1154_p4, 1, 0 }
   0xc   : > { %s1396_s28 = scalar_select %p1159_p6, 1, 0 }
   0xd   : > { %p1164_p8 = pnand %p728_p5, %p190_p7  ;;  %s202_s7 = sshll.u32 %s1080_s30, 4  ;;  %s1168_s7 = int_to_ptr.vmem [resolvable:$true] %s202_s7 }
   0xe   : > { %s1081_s9 = smov [#allocation7]   ;;  %s922_s13 = scalar_lea.hbm %s1387_s2, 1024 }
   0xf   : > { %p833_p9 = pneg %p1164_p8  ;;  %s218_s10 = sshll.u32 %s1081_s9, 4  ;;  %s1179_s10 = int_to_ptr.vmem [resolvable:$true] %s218_s10 }
  0x10   : > { %p923_p12 = scmp.ne.s32.totalorder %s1387_s2, %s922_s13  ;;  %p929_p5 = scmp.lt.u32.totalorder %s922_s13, %s1387_s2 }
  0x11   : > { %p1175_p11 = pnand %p833_p9, %p1392_p1 }
  0x13   : > { %p924_p13 = pneg %p1175_p11 }
  0x15   : > { %p925_p0 = pnand %p924_p13, %p923_p12 }
  0x17   : > { %p926_p3 = pneg %p925_p0 }
  0x19   : > { %p931_p7 = pnand %p929_p5, %p926_p3 }
  0x1b   : > { %934 = shalt.err (!%p931_p7)
}
  0x1c   : > { %s935_s18 = scalar_lea.vmem %s1168_s7, 1024  ;;  %p943_p2 = scmp.lt.s32.totalorder %s1168_s7, %s1168_s7 }
  0x1d   : > { %p936_p9 = scmp.ne.s32.totalorder %s1168_s7, %s935_s18  ;;  %p944_p12 = scmp.lt.s32.totalorder %s935_s18, %s935_s18 }
  0x1f   : > { %p938_p10 = pnand %p936_p9, %p924_p13  ;;  %p945_p0 = por %p944_p12, %p943_p2 }
  0x21   : > { %p939_p1 = pneg %p938_p10 }
  0x23   : > { %p946_p6 = pnand %p945_p0, %p939_p1 }
  0x25   : > { %949 = shalt.err (!%p946_p6)
}
  0x26   : > { %s1082_s19 = smov 64   ;;  %s1083_s20 = smov 4  }
  0x27   : > { %836 = dma.hbm_to_vmem [thread:$0]  (!%p1175_p11), %s1387_s2, 1024, %s1168_s7, [#allocation6], %s1082_s19, %s1082_s19, %s1083_s20  }
  0x28   : > { %s950_s12 = scalar_lea.hbm %s1389_s4, 1024 }
  0x29   : > { %p951_p1 = scmp.ne.s32.totalorder %s1389_s4, %s950_s12  ;;  %p957_p10 = scmp.lt.u32.totalorder %s950_s12, %s1389_s4 }
  0x2b   : > { %p953_p2 = pnand %p951_p1, %p924_p13 }
  0x2d   : > { %p954_p6 = pneg %p953_p2 }
  0x2f   : > { %p959_p3 = pnand %p957_p10, %p954_p6 }
  0x31   : > { %962 = shalt.err (!%p959_p3)
}
  0x32   : > { %s963_s7 = scalar_lea.vmem %s1179_s10, 1024  ;;  %p971_p12 = scmp.lt.s32.totalorder %s1179_s10, %s1179_s10 }
  0x33   : > { %p964_p5 = scmp.ne.s32.totalorder %s1179_s10, %s963_s7  ;;  %p972_p0 = scmp.lt.s32.totalorder %s963_s7, %s963_s7 }
  0x35   : > { %p966_p7 = pnand %p964_p5, %p924_p13  ;;  %p973_p1 = por %p972_p0, %p971_p12 }
  0x37   : > { %p967_p9 = pneg %p966_p7 }
  0x39   : > { %p974_p2 = pnand %p973_p1, %p967_p9 }
  0x3b   : > { %977 = shalt.err (!%p974_p2)
}
  0x3c   : > { %839 = dma.hbm_to_vmem [thread:$0]  (!%p1175_p11), %s1389_s4, 1024, %s1179_s10, [#allocation6], %s1082_s19, %s1082_s19, %s1083_s20  }
  0x3d   : > { %s1240_s8 = sadd.s32 1, %s1078_s24   ;;  %s30_s26 = sadd.s32 1, %s1074_s23 }
  0x3e   : > { %s27_s30 = ssub.s32 %s1078_s24, %s1240_s8  ;;  %p37_p13 = scmp.ne.s32.totalorder %s1074_s23, %s1070_s22 }
  0x3f   : > { %p28_p6 = scmp.eq.s32.totalorder %s27_s30, 0  ;;  %p38_p10 = scmp.eq.s32.totalorder %s1078_s24, 0 }
  0x40   : > { %p1399_p3 = scmp.eq.s32.totalorder %s1145_s25, 1  ;;  %p850_p7 = scmp.lt.s32.totalorder %s1078_s24, 2 }
  0x41   : > { %s1256_s11 = scalar_select %p28_p6, %s1074_s23, %s30_s26  }
  0x42   : > { %p1250_p5 = por %p1399_p3, %p37_p13  ;;  %p39_p9 = por %p38_p10, %p37_p13 }
  0x43   : > { %s235_s12 = sand.u32 1, %s1074_s23   ;;  %s762_s10 = sshll.u32 %s1078_s24, 7 }
  0x44   : > { %s1400_s9 = scalar_select %p1250_p5, 1, 0 }
  0x45   : > { %s732_s13 = sshll.u32 %s235_s12, 3  ;;  %s1263_s16 = scalar_lea.hbm %s1385_s0, %s762_s10 }
  0x46   : > { %s239_s7 = scalar_lea.vmem [#allocation2], %s732_s13  ;;  %p1267_p11 = pnand %p850_p7, %p39_p9 }
  0x47   : > { %s246_s17 = sshll.u32 %s239_s7, 4  ;;  %s1271_s26 = scalar_lea.sflag [#allocation3], %s235_s12  ;;  %s1265_s17 = int_to_ptr.vmem [resolvable:$true] %s246_s17 }
  0x48   : > { %s978_s30 = scalar_lea.hbm %s1263_s16, 128  ;;  %p980_p0 = pneg %p1267_p11 }
  0x49   : > { %p979_p12 = scmp.ne.s32.totalorder %s1263_s16, %s978_s30  ;;  %s983_s14 = scalar_lea.hbm %s1385_s0, 256 }
  0x4a   : > { %p984_p13 = scmp.lt.u32.totalorder %s1263_s16, %s1385_s0  ;;  %p985_p6 = scmp.lt.u32.totalorder %s983_s14, %s978_s30 }
  0x4b   : > { %p981_p1 = pnand %p980_p0, %p979_p12  ;;  %p987_p3 = scmp.lt.u32.totalorder %s978_s30, %s1263_s16 }
  0x4c   : > { %p986_p10 = por %p985_p6, %p984_p13 }
  0x4d   : > { %p982_p2 = pneg %p981_p1 }
  0x4e   : > { %p988_p7 = por %p987_p3, %p986_p10 }
  0x50   : > { %p989_p9 = pnand %p988_p7, %p982_p2 }
  0x52   : > { %992 = shalt.err (!%p989_p9)
}
  0x53   : > { %s993_s12 = scalar_lea.vmem %s1265_s17, 128  ;;  %s1084_s13 = smov [#allocation2]  }
  0x54   : > { %p994_p12 = scmp.ne.s32.totalorder %s1265_s17, %s993_s12  ;;  %s998_s10 = sshll.u32 %s1084_s13, 4  ;;  %s999_s10 = int_to_ptr.vmem [resolvable:$false] %s998_s10 }
  0x55   : > { %s1000_s15 = scalar_lea.vmem %s999_s10, 256  ;;  %p1001_p4 = scmp.lt.s32.totalorder %s1265_s17, %s999_s10 }
  0x56   : > { %p996_p1 = pnand %p994_p12, %p980_p0  ;;  %p1002_p13 = scmp.lt.s32.totalorder %s1000_s15, %s993_s12 }
  0x58   : > { %p997_p5 = pneg %p996_p1  ;;  %p1003_p6 = por %p1002_p13, %p1001_p4 }
  0x5a   : > { %p1004_p10 = pnand %p1003_p6, %p997_p5 }
  0x5c   : > { %1007 = shalt.err (!%p1004_p10)
}
  0x5d   : > { %843 = dma.hbm_to_vmem [thread:$0]  (!%p1267_p11), %s1263_s16, 128, %s1265_s17, %s1271_s26, %s1082_s19, %s1082_s19, %s1083_s20  }
  0x5e   : > { %264 = sbr.rel (%p1164_p8) target bundleno = 670 (0x29e), region = 44  ;;  %s1305_s30 = sand.u32 (!%p1164_p8), 1, %s1070_s22  }
  0x5f   : > { %s736_s14 = sshll.u32 (!%p1164_p8), %s1305_s30, 3  ;;  %s267_s7 = scalar_lea.sflag (!%p1164_p8), [#allocation3], %s1305_s30 }
  0x60   : > { %s1309_s12 = scalar_lea.vmem (!%p1164_p8), [#allocation2], %s736_s14  ;;  %p1402_p4 = scmp.ne.s32.totalorder (!%p1164_p8), %s1395_s27, 0 }
  0x65   : > { %1053 = dma.done.wait (%p1402_p4), %s267_s7, 128  }
  0x66   : > { %1055 = vsyncadd (%p1402_p4), %s267_s7, 4294967168  ;;  %p1403_p5 = scmp.eq.s32.totalorder %s1145_s25, 0 }
  0x68   : > { %1057 = dma.done.wait (%p1403_p5), [#allocation6], 2048   ;;  %p1404_p8 = pmov %p1403_p5 }
  0x69   : > { %v1085_v0 = vmov 0.0   ;;  %vm1086_vm0 = vmmov 0   ;;  %v894_v1 = vld [vmem:[#allocation5] sm:$0xff]   ;;  %v895_v2 = vld [vmem:[#allocation5 + $0x8] sm:$0xff]   ;;  %v896_v3 = vld [vmem:[#allocation5 + $0x10] sm:$0xff]   ;;  %p309_p11 = scmp.lt.s32.totalorder %s1145_s25, 1  ;;  %v564_v18 = vlaneseq }
  0x6a   : > { %1059 = vsyncadd (%p1404_p8), [#allocation6], 4294965248  ;;  %781 = vmatprep.subr.bf16.mxu0 %v1085_v0  ;;  %797 = vmatprep.mubr.msk.bf16.mxu0 %vm1086_vm0, %v1085_v0  ;;  %v897_v4 = vld [vmem:[#allocation5 + $0x18] sm:$0xff]   ;;  %v898_v5 = vld [vmem:[#allocation5 + $0x20] sm:$0xff]   ;;  %v1087_v19 = vmov 0   ;;  %s759_s13 = sshll.u32 %s1145_s25, 4 }
  0x6b   : > { %801 = vmatprep.subr.bf16.mxu1 %v1085_v0  ;;  %817 = vmatprep.mubr.msk.bf16.mxu1 %vm1086_vm0, %v1085_v0  ;;  %v899_v6 = vld [vmem:[#allocation5 + $0x28] sm:$0xff]   ;;  %v900_v7 = vld [vmem:[#allocation5 + $0x30] sm:$0xff]   ;;  %v901_v8 = vld [vmem:[#allocation5 + $0x38] sm:$0xff]   ;;  %s310_s27 = scalar_select %p309_p11, %s1145_s25, 1  ;;  %v565_v20 = vshrl.u32 %v564_v18, 7 }
  0x6c   : > { %782 = vmatpush3.bf16.msra.mxu0 %v894_v1  ;;  %v1320_v9 = vld [vmem:[%s1309_s12] sm:$0xff]   ;;  %v903_v10 = vld [vmem:[#allocation7] sm:$0xff]   ;;  %v904_v11 = vld [vmem:[#allocation7 + $0x8] sm:$0xff]   ;;  %893 = vset.pattern.permute.xlu0 %v1087_v19  ;;  %s308_s10 = scalar_lea.vmem [#allocation8], %s1305_s30  ;;  %s1341_s12 = scalar_lea.hbm %s1391_s6, %s759_s13 }
  0x6d   : > { %783 = vmatprep.subr.bf16.mxu0 %v1085_v0  ;;  %802 = vmatpush3.bf16.msra.mxu1 %v903_v10  ;;  %v905_v12 = vld [vmem:[#allocation7 + $0x10] sm:$0xff]   ;;  %v906_v13 = vld [vmem:[#allocation7 + $0x18] sm:$0xff]   ;;  %v907_v14 = vld [vmem:[#allocation7 + $0x20] sm:$0xff]   ;;  %s311_s20 = scalar_lea.vmem %s1386_s1, %s310_s27  ;;  %v566_v21 = vadd.s32 8, %v565_v20  ;;  %v606_v10 = vunpack.c.l.bf16 %v1320_v9  ;;  %s633_s15 = sshll.u32 %s308_s10, 4  ;;  %s1343_s15 = int_to_ptr.vmem [resolvable:$true] %s633_s15 }
  0x6e   : > { %803 = vmatprep.subr.bf16.mxu1 %v1085_v0  ;;  %v908_v15 = vld [vmem:[#allocation7 + $0x28] sm:$0xff]   ;;  %v909_v16 = vld [vmem:[#allocation7 + $0x30] sm:$0xff]   ;;  %v910_v17 = vld [vmem:[#allocation7 + $0x38] sm:$0xff]   ;;  %s621_s27 = scalar_lea.sflag [#allocation4], %s1305_s30  ;;  %s1008_s29 = scalar_lea.vmem %s1343_s15, 16 }
  0x6f   : > { %v758_v22 = vld [vmem:[%s311_s20] ss:$0 sm:$0xff]  ;;  %p1009_p0 = scmp.ne.s32.totalorder %s1343_s15, %s1008_s29  ;;  %p1405_p2 = scmp.ne.s32.totalorder %s1400_s9, 0 }
  0x70   : > { %784 = vmatpush3.bf16.msra.mxu0 %v895_v2  ;;  %vm572_vm1 = vcmp.ge.s32.totalorder %v565_v20, %v758_v22  ;;  %vm573_vm2 = vcmp.ge.s32.totalorder %v566_v21, %v758_v22  ;;  %v739_v25 = vld [vmem:[%s1388_s3] ss:$0 sm:$0xff]  ;;  %s1088_s25 = smov [#allocation8]  }
  0x71   : > { %785 = vmatprep.subr.bf16.mxu0 %v1085_v0  ;;  %804 = vmatpush3.bf16.msra.mxu1 %v904_v11  ;;  %v574_v23 = vsel %vm572_vm1, 1, %v1087_v19  ;;  %v575_v24 = vsel %vm573_vm2, 1, %v1087_v19  ;;  %v749_v52 = vld [vmem:[%s1390_s5] ss:$0 sm:$0xff]  ;;  %v607_v11 = vunpack.c.h.bf16 %v1320_v9  ;;  %p1010_p3 = pnand %p1009_p0, %p1405_p2  ;;  %s1012_s19 = sshll.u32 %s1088_s25, 4  ;;  %s1013_s19 = int_to_ptr.vmem [resolvable:$false] %s1012_s19 }
  0x72   : > { %805 = vmatprep.subr.bf16.mxu1 %v1085_v0  ;;  %577 = vperm.xlu0 %893, %v574_v23   ;;  %s1014_s20 = scalar_lea.vmem %s1013_s19, 32  ;;  %p1015_p9 = scmp.lt.s32.totalorder %s1343_s15, %s1013_s19 }
  0x73   : > { %p1011_p7 = pneg %p1010_p3  ;;  %p1016_p12 = scmp.lt.s32.totalorder %s1014_s20, %s1008_s29 }
  0x74   : > { %786 = vmatpush3.bf16.msra.mxu0 %v896_v3 }
  0x75   : > { %787 = vmatprep.subr.bf16.mxu0 %v1085_v0  ;;  %806 = vmatpush3.bf16.msra.mxu1 %v905_v12  ;;  %p1017_p1 = por %p1016_p12, %p1015_p9 }
  0x76   : > { %807 = vmatprep.subr.bf16.mxu1 %v1085_v0  ;;  %580 = vperm.xlu0 %893, %v575_v24  }
  0x77   : > { %p1018_p13 = pnand %p1017_p1, %p1011_p7 }
  0x78   : > { %788 = vmatpush3.bf16.msra.mxu0 %v897_v4 }
  0x79   : > { %789 = vmatprep.subr.bf16.mxu0 %v1085_v0  ;;  %808 = vmatpush3.bf16.msra.mxu1 %v906_v13 }
  0x7a   : > { %809 = vmatprep.subr.bf16.mxu1 %v1085_v0 }
  0x7c   : > { %790 = vmatpush3.bf16.msra.mxu0 %v898_v5 }
  0x7d   : > { %791 = vmatprep.subr.bf16.mxu0 %v1085_v0  ;;  %810 = vmatpush3.bf16.msra.mxu1 %v907_v14 }
  0x7e   : > { %811 = vmatprep.subr.bf16.mxu1 %v1085_v0 }
  0x80   : > { %792 = vmatpush3.bf16.msra.mxu0 %v899_v6 }
  0x81   : > { %793 = vmatprep.subr.bf16.mxu0 %v1085_v0  ;;  %812 = vmatpush3.bf16.msra.mxu1 %v908_v15 }
  0x82   : > { %813 = vmatprep.subr.bf16.mxu1 %v1085_v0 }
  0x84   : > { %794 = vmatpush3.bf16.msra.mxu0 %v900_v7 }
  0x85   : > { %795 = vmatprep.subr.bf16.mxu0 %v1085_v0  ;;  %814 = vmatpush3.bf16.msra.mxu1 %v909_v16 }
  0x86   : > { %815 = vmatprep.subr.bf16.mxu1 %v1085_v0 }
  0x88   : > { %796 = vmatpush3.bf16.msra.mxu0 %v901_v8 }
  0x89   : > { %816 = vmatpush3.bf16.msra.mxu1 %v910_v17 }
  0x8b   : > { %798 = vmatmul.mubr.bf16.vlgmr.msra.gmra.mrb[0].mxu0 %v1320_v9 }
  0xf1   : > { %v578_v51 = vpop.permute.xlu0 %577 }
  0xf2   : > { %vm582_vm3 = vcmp.eq.s32.totalorder %v578_v51, 1 }
  0xf5   : > { %v581_v54 = vpop.permute.xlu0 %580 }
  0xf6   : > { %vm583_vm4 = vcmp.eq.s32.totalorder %v581_v54, 1 }
 0x15e   : > { %v426_v26 = vpop.f32.mrb[0].mxu0 }
 0x15f   : > { %v427_v27 = vadd.f32 %v739_v25, %v426_v26  ;;  %v799_v28 = vpop.f32.mrb[1].mxu0 }
 0x160   : > { %v429_v29 = vpop.f32.mrb[2].mxu0 }
 0x161   : > { %v435_v30 = vmul.f32 %v427_v27, %v427_v27  ;;  %v430_v31 = vadd.f32 %v739_v25, %v429_v29  ;;  %v800_v32 = vpop.f32.mrb[3].mxu0  ;;  %v433_v45 = vmul.f32 0.5, %v427_v27 }
 0x163   : > { %v437_v33 = vmul.f32 %v435_v30, %v427_v27  ;;  %v436_v34 = vmul.f32 %v430_v31, %v430_v31  ;;  %v434_v46 = vmul.f32 0.5, %v430_v31 }
 0x165   : > { %v439_v35 = vmul.f32 0.044715, %v437_v33  ;;  %v438_v36 = vmul.f32 %v436_v34, %v430_v31 }
 0x167   : > { %v441_v37 = vadd.f32 %v439_v35, %v427_v27  ;;  %v440_v38 = vmul.f32 0.044715, %v438_v36 }
 0x169   : > { %v443_v39 = vmul.f32 0.7978846, %v441_v37  ;;  %v442_v40 = vadd.f32 %v440_v38, %v430_v31 }
 0x16b   : > { %912 = vtanh.f32 %v443_v39  ;;  %v444_v41 = vmul.f32 0.7978846, %v442_v40 }
 0x16d   : > { %914 = vtanh.f32 %v444_v41 }
 0x175   : > { %v913_v42 = vpop.eup %912 }
 0x176   : > { %v447_v43 = vadd.f32 1.0, %v913_v42 }
 0x177   : > { %v915_v44 = vpop.eup %914 }
 0x178   : > { %v448_v47 = vadd.f32 1.0, %v915_v44  ;;  %v449_v48 = vmul.f32 %v447_v43, %v433_v45 }
 0x17a   : > { %v450_v49 = vmul.f32 %v448_v47, %v434_v46 }
 0x17c   : > { %v451_v50 = vpack.c.bf16 %v450_v49, %v449_v48 }
 0x17e   : > { %818 = vmatmul.mubr.bf16.vlgmr.msra.gmra.mrb[0].mxu1 %v451_v50 }
 0x251   : > { %v557_v53 = vpop.f32.mrb[0].mxu1 }
 0x252   : > { %v558_v55 = vadd.f32 %v749_v52, %v557_v53  ;;  %v819_v56 = vpop.f32.mrb[1].mxu1 }
 0x253   : > { %v560_v57 = vpop.f32.mrb[2].mxu1 }
 0x254   : > { %v561_v58 = vadd.f32 %v749_v52, %v560_v57  ;;  %v820_v59 = vpop.f32.mrb[3].mxu1  ;;  %v584_v60 = vsel %vm582_vm3, -32752.0, %v558_v55 }
 0x256   : > { %v585_v61 = vsel %vm583_vm4, -32752.0, %v561_v58 }
 0x257   : > { %v586_v62 = vmax.f32 %v584_v60, %v585_v61 }
 0x259   : > { %v587_v63 = vrot.slane %v586_v62, 4 }
 0x25b   : > { %v588_v0 = vmax.f32 %v586_v62, %v587_v63 }
 0x25d   : > { %v589_v1 = vrot.slane %v588_v0, 2 }
 0x25f   : > { %v590_v2 = vmax.f32 %v588_v0, %v589_v1 }
 0x261   : > { %v591_v3 = vrot.slane %v590_v2, 1 }
 0x263   : > { %v592_v4 = vmax.f32 %v590_v2, %v591_v3 }
 0x265   : > { %v593_v5 = vsub.f32 %v584_v60, %v592_v4  ;;  %v594_v6 = vsub.f32 %v585_v61, %v592_v4 }
 0x267   : > { %v595_v7 = vmul.f32 1.442695, %v593_v5  ;;  %v597_v8 = vmul.f32 1.442695, %v594_v6 }
 0x269   : > { %916 = vpow2.f32 %v595_v7 }
 0x26a   : > { %918 = vpow2.f32 %v597_v8 }
 0x273   : > { %v917_v12 = vpop.eup %916 }
 0x274   : > { %v919_v13 = vpop.eup %918  ;;  %v608_v14 = vmul.f32 %v917_v12, %v606_v10 }
 0x275   : > { %v599_v15 = vadd.f32 %v919_v13, %v917_v12  ;;  %v609_v16 = vmul.f32 %v919_v13, %v607_v11 }
 0x277   : > { %v600_v17 = vrot.slane %v599_v15, 4  ;;  %v610_v18 = vadd.f32 %v609_v16, %v608_v14 }
 0x279   : > { %v601_v19 = vadd.f32 %v600_v17, %v599_v15  ;;  %v611_v20 = vrot.slane %v610_v18, 4 }
 0x27b   : > { %v602_v21 = vrot.slane %v601_v19, 2  ;;  %v612_v22 = vadd.f32 %v611_v20, %v610_v18 }
 0x27d   : > { %v603_v23 = vadd.f32 %v602_v21, %v601_v19  ;;  %v613_v25 = vrot.slane %v612_v22, 2 }
 0x27f   : > { %v604_v24 = vrot.slane %v603_v23, 1  ;;  %v614_v9 = vadd.f32 %v613_v25, %v612_v22 }
 0x281   : > { %v605_v26 = vadd.f32 %v604_v24, %v603_v23  ;;  %v615_v27 = vrot.slane %v614_v9, 1 }
 0x283   : > { %920 = vrcp.f32 %v605_v26  ;;  %v616_v28 = vadd.f32 %v615_v27, %v614_v9 }
 0x28d   : > { %v921_v29 = vpop.eup %920 }
 0x28e   : > { %v618_v30 = vmul.f32 %v921_v29, %v616_v28 }
 0x290   : > { %619 = vst [vmem:[%s308_s10] sm:$0x1] %v618_v30 }
 0x291   : > { %1021 = shalt.err (!%p1018_p13)
}
 0x292   : > { %s1022_s30 = scalar_lea.hbm %s1341_s12, 16  ;;  %s1026_s18 = scalar_lea.hbm %s1391_s6, 32 }
 0x293   : > { %p1023_p6 = scmp.ne.s32.totalorder %s1341_s12, %s1022_s30  ;;  %p1027_p5 = scmp.lt.u32.totalorder %s1341_s12, %s1391_s6 }
 0x294   : > { %p1028_p8 = scmp.lt.u32.totalorder %s1026_s18, %s1022_s30  ;;  %p1030_p0 = scmp.lt.u32.totalorder %s1022_s30, %s1341_s12 }
 0x295   : > { %p1024_p10 = pnand %p1023_p6, %p1405_p2 }
 0x296   : > { %p1029_p11 = por %p1028_p8, %p1027_p5 }
 0x297   : > { %p1025_p4 = pneg %p1024_p10 }
 0x298   : > { %p1031_p3 = por %p1030_p0, %p1029_p11 }
 0x29a   : > { %p1032_p7 = pnand %p1031_p3, %p1025_p4 }
 0x29c   : > { %1035 = shalt.err (!%p1032_p7)
}
 0x29d   : > { %831 = dma.vmem_to_hbm [thread:$0]  (%p1405_p2), %s1343_s15, 16, %s1341_s12, %s621_s27  }
 0x29e PF: > { %s645_s10 = sand.u32 1, %s1066_s21   ;;  %p1406_p9 = scmp.ne.s32.totalorder %s1396_s28, 0 }
 0x29f   : > { %p1407_p12 = scmp.ge.s32.totalorder %s1078_s24, 2  ;;  %s646_s14 = scalar_lea.sflag [#allocation4], %s645_s10 }
 0x2a1   : > { %p845_p1 = pnand %p1407_p12, %p1406_p9 }
 0x2a3   : > { %1061 = dma.done.wait (!%p845_p1), %s646_s14, 16  }
 0x2a4   : > { %1063 = vsyncadd (!%p845_p1), %s646_s14, 4294967280  ;;  %p20_p13 = scmp.ge.s32.totalorder %s1240_s8, 4   ;;  %s1408_s21 = smov %s1070_s22 }
 0x2a5   : > { %s1409_s22 = smov %s1074_s23  ;;  %s1410_s23 = smov %s1256_s11 }
 0x2a6   : > { %s1411_s24 = smov %s1240_s8  ;;  %22 = sbr.rel (!%p20_p13) target bundleno = 6 (0x6), region = 100 }
 0x2ad   :  { %650 = vsyncpa [#allocation3], 1 }
 0x2ae   :  { %652 = vsyncpa [#allocation3 + $0x1], 1 }
 0x2af   :  { %653 = vsyncpa [#allocation6], 1 }
 0x2b0   :  { %654 = vsyncpa [#allocation4], 1 }
 0x2b1   :  { %656 = vsyncpa [#allocation4 + $0x1], 1 }

</bundles_post_ra>
